<compile_context>
chip_gen: v5e
topology: v5e:2x2
jax: 0.10.0
libtpu: 0.0.40
codegen_flags: <defaults>
</compile_context>

<pallas_src>
import functools

import jax
import jax.numpy as jnp
from jax.experimental import pallas as pl
from jax.experimental.pallas import tpu as pltpu


def _interp_matrix(out_size: int, in_size: int) -> jnp.ndarray:
    """Bilinear interpolation matrix (out_size, in_size), align_corners=True."""
    if in_size == 1:
        return jnp.ones((out_size, 1), jnp.float32)
    if out_size == 1:
        return jnp.zeros((1, in_size), jnp.float32).at[0, 0].set(1.0)
    scale = (in_size - 1) / (out_size - 1)
    coords = jnp.arange(out_size, dtype=jnp.float32) * scale
    i0 = jnp.clip(jnp.floor(coords).astype(jnp.int32), 0, in_size - 2)
    frac = coords - i0.astype(jnp.float32)
    rows = jnp.arange(out_size)
    w = jnp.zeros((out_size, in_size), jnp.float32)
    w = w.at[rows, i0].set(1.0 - frac)
    w = w.at[rows, i0 + 1].add(frac)
    return w


def _pick_row_tile(h: int, row_tile) -> int:
    """Largest H-tile that is a multiple of 8 (or == H) and divides H."""
    if row_tile is not None:
        if h % row_tile != 0 or (row_tile % 8 != 0 and row_tile != h):
            raise ValueError(f"row_tile={row_tile} incompatible with H={h}")
        return row_tile
    best = h
    for t in range(8, min(h, 256) + 1, 8):
        if h % t == 0:
            best = t
    return best


def _dsn_kernel(pred_ref, wh_ref, wwT_ref, tgt_ref, out_ref, *,
                num_classes: int, wp: int, ignore_index: int):
    wh = wh_ref[...]                # (TH, hp)   bf16
    wwT = wwT_ref[...]              # (wp, W)    bf16
    tgt = tgt_ref[0]                # (TH, W)    int32
    pred2d = pred_ref[0, 0]         # (hp, C*wp) bf16

    # Stage 1: upsample rows, fused across all classes (one big MXU call).
    t1 = jnp.dot(wh, pred2d, preferred_element_type=jnp.float32)  # (TH, C*wp)
    t1 = t1.astype(jnp.bfloat16)

    # Stage 2 + online (flash-style) logsumexp over classes.
    m = None        # running max              (TH, W) f32
    s = None        # running sum of exp       (TH, W) f32
    tl = None       # gathered target logit    (TH, W) f32
    for c in range(num_classes):
        up = jnp.dot(t1[:, c * wp:(c + 1) * wp], wwT,
                     preferred_element_type=jnp.float32)          # (TH, W)
        hit = jnp.where(tgt == c, up, 0.0)
        if c == 0:
            m = up
            s = jnp.ones_like(up)
            tl = hit
        else:
            m_new = jnp.maximum(m, up)
            s = s * jnp.exp(m - m_new) + jnp.exp(up - m_new)
            m = m_new
            tl = tl + hit

    valid = tgt != ignore_index
    lse = m + jnp.log(s)
    per_pixel = jnp.where(valid, lse - tl, 0.0)
    out_ref[...] = jnp.sum(per_pixel).reshape(1, 1, 1)


def _dsn_loss_sums(preds_stacked, target, *, ignore_index, row_tile=None):
    """preds_stacked: (num_heads, N, C, hp, wp).  Returns per-head sum of
    per-pixel CE over valid pixels of the bilinearly-upsampled logits."""
    nh, n, c, hp, wp = preds_stacked.shape
    h, w = target.shape[1], target.shape[2]

    th = _pick_row_tile(h, row_tile)
    ht = h // th

    wh = _interp_matrix(h, hp).astype(jnp.bfloat16)       # (H, hp)
    wwT = _interp_matrix(w, wp).T.astype(jnp.bfloat16)    # (wp, W)

    # Lane-dense pred layout: (nh, N, hp, C*wp) bf16 (class-major on lanes).
    pred2d = jnp.transpose(preds_stacked, (0, 1, 3, 2, 4)).reshape(nh, n, hp, c * wp)
    pred2d = pred2d.astype(jnp.bfloat16)
    tgt = target.astype(jnp.int32)

    g = nh * n * ht
    kernel = functools.partial(_dsn_kernel, num_classes=c, wp=wp,
                               ignore_index=ignore_index)

    partial_sums = pl.pallas_call(
        kernel,
        out_shape=jax.ShapeDtypeStruct((g, 1, 1), jnp.float32),
        grid_spec=pltpu.PrefetchScalarGridSpec(
            num_scalar_prefetch=0,
            grid=(nh, n, ht),
            in_specs=[
                pl.BlockSpec((1, 1, hp, c * wp), lambda hd, b, j: (hd, b, 0, 0)),
                pl.BlockSpec((th, hp), lambda hd, b, j: (j, 0)),
                pl.BlockSpec((wp, w), lambda hd, b, j: (0, 0)),
                pl.BlockSpec((1, th, w), lambda hd, b, j: (b, j, 0)),
            ],
            out_specs=pl.BlockSpec(
                (1, 1, 1), lambda hd, b, j: ((hd * n + b) * ht + j, 0, 0)),
        ),
        compiler_params=pltpu.CompilerParams(
            dimension_semantics=("parallel", "parallel", "parallel"),
            vmem_limit_bytes=64 * 1024 * 1024),
    )(pred2d, wh, wwT, tgt)

    return jnp.sum(partial_sums.reshape(nh, -1), axis=1)   # (nh,)


def criterion_dsn(preds, target, ignore_index=255, row_tile=None):
    """JAX/Pallas equivalent of CriterionDSN.forward(preds, target)."""
    target = target.astype(jnp.int32)
    count = jnp.sum((target != ignore_index).astype(jnp.float32))

    p0, p1 = preds[0], preds[1]
    if p0.shape == p1.shape:
        sums = _dsn_loss_sums(jnp.stack([p0, p1], axis=0), target,
                              ignore_index=ignore_index, row_tile=row_tile)
        s0, s1 = sums[0], sums[1]
    else:
        s0 = _dsn_loss_sums(p0[None], target, ignore_index=ignore_index,
                            row_tile=row_tile)[0]
        s1 = _dsn_loss_sums(p1[None], target, ignore_index=ignore_index,
                            row_tile=row_tile)[0]
    return s0 / count + 0.4 * (s1 / count)


def _reference(preds, target, ignore_index=255):
    """Pure-JAX reference (same interp matrices, same bf16 input rounding —
    the bf16 feed is a deliberate TPU perf choice; accumulation is f32)."""
    tgt = target.astype(jnp.int32)
    valid = tgt != ignore_index
    count = jnp.sum(valid.astype(jnp.float32))

    def one(pred):
        n, c, hp, wp = pred.shape
        h, w = target.shape[1], target.shape[2]
        wh = _interp_matrix(h, hp).astype(jnp.bfloat16).astype(jnp.float32)
        ww = _interp_matrix(w, wp).astype(jnp.bfloat16).astype(jnp.float32)
        p = pred.astype(jnp.bfloat16).astype(jnp.float32)
        up = jnp.einsum('Hh,nchw->ncHw', wh, p)
        up = jnp.einsum('ncHw,Ww->ncHW', up, ww)
        lse = jax.nn.logsumexp(up, axis=1)                      # (n, H, W)
        safe_tgt = jnp.where(tgt == ignore_index, 0, tgt)
        tgt_logit = jnp.take_along_axis(up, safe_tgt[:, None], axis=1)[:, 0]
        per_pixel = jnp.where(valid, lse - tgt_logit, 0.0)
        return jnp.sum(per_pixel) / count

    return one(preds[0]) + 0.4 * one(preds[1])


if __name__ == "__main__":
    key = jax.random.PRNGKey(0)
    k1, k2, k3, k4 = jax.random.split(key, 4)

    N, C = 2, 4
    HP, WP = 8, 8          # prediction resolution
    H, W = 16, 16          # target resolution

    pred0 = jax.random.normal(k1, (N, C, HP, WP), jnp.float32)
    pred1 = jax.random.normal(k2, (N, C, HP, WP), jnp.float32)
    target = jax.random.randint(k3, (N, H, W), 0, C, jnp.int32)
    # sprinkle some ignore_index pixels
    ignore_mask = jax.random.bernoulli(k4, 0.1, (N, H, W))
    target = jnp.where(ignore_mask, 255, target)

    # row_tile=8 exercises the H-tile grid axis (HT=2) at this small shape.
    loss = criterion_dsn((pred0, pred1), target, row_tile=8)
    loss = jax.block_until_ready(loss)

    ref = _reference((pred0, pred1), target)
    assert jnp.allclose(loss, ref, rtol=1e-2, atol=2e-3), (loss, ref)

    print("KERNEL_OK")
</pallas_src>

<mosaic_0001>
module attributes {stable_mosaic.version = 11 : i64} {
  func.func @_dsn_kernel(%arg0: i32, %arg1: i32, %arg2: i32, %arg3: memref<1x1x8x32xbf16, #tpu.memory_space<vmem>>, %arg4: memref<8x8xbf16, #tpu.memory_space<vmem>>, %arg5: memref<8x16xbf16, #tpu.memory_space<vmem>>, %arg6: memref<1x8x16xi32, #tpu.memory_space<vmem>>, %arg7: memref<1x1x1xf32, #tpu.memory_space<vmem>>) attributes {dimension_semantics = [#tpu.dimension_semantics<parallel>, #tpu.dimension_semantics<parallel>, #tpu.dimension_semantics<parallel>], iteration_bounds = array<i64: 2, 2, 2>, scalar_prefetch = 0 : i64, scratch_operands = 0 : i64, tpu.core_type = #tpu.core_type<tc>, window_params = [{transform_indices = @transform_0, window_bounds = array<i64: 1, 1, 8, 32>}, {transform_indices = @transform_1, window_bounds = array<i64: 8, 8>}, {pipeline_mode = #tpu.pipeline_mode<synchronous>, transform_indices = @transform_2, window_bounds = array<i64: 8, 16>}, {transform_indices = @transform_3, window_bounds = array<i64: 1, 8, 16>}, {transform_indices = @transform_4, window_bounds = array<i64: 1, 1, 1>}]} {
    %c0 = arith.constant 0 : index
    %c0_0 = arith.constant 0 : index
    %0 = vector.load %arg4[%c0, %c0_0] : memref<8x8xbf16, #tpu.memory_space<vmem>>, vector<8x8xbf16>
    %c0_1 = arith.constant 0 : index
    %c0_2 = arith.constant 0 : index
    %1 = vector.load %arg5[%c0_1, %c0_2] : memref<8x16xbf16, #tpu.memory_space<vmem>>, vector<8x16xbf16>
    %c0_3 = arith.constant 0 : index
    %c0_4 = arith.constant 0 : index
    %c0_5 = arith.constant 0 : index
    %2 = vector.load %arg6[%c0_3, %c0_4, %c0_5] : memref<1x8x16xi32, #tpu.memory_space<vmem>>, vector<1x8x16xi32>
    %3 = vector.shape_cast %2 : vector<1x8x16xi32> to vector<8x16xi32>
    %c0_6 = arith.constant 0 : index
    %c0_7 = arith.constant 0 : index
    %c0_8 = arith.constant 0 : index
    %c0_9 = arith.constant 0 : index
    %4 = vector.load %arg3[%c0_6, %c0_7, %c0_8, %c0_9] : memref<1x1x8x32xbf16, #tpu.memory_space<vmem>>, vector<1x1x8x32xbf16>
    %5 = vector.shape_cast %4 : vector<1x1x8x32xbf16> to vector<8x32xbf16>
    %cst = arith.constant dense<0.000000e+00> : vector<8x32xf32>
    %6 = tpu.matmul %0, %5, %cst {dimension_numbers = #tpu.dot_dimension_numbers<[1], [0], [0], [1], [0, 0, 1, 1], [], []>} : vector<8x8xbf16>, vector<8x32xbf16>, vector<8x32xf32> -> vector<8x32xf32>
    %7 = arith.truncf %6 : vector<8x32xf32> to vector<8x32xbf16>
    %8 = vector.extract_strided_slice %7 {offsets = [0, 0], sizes = [8, 8], strides = [1, 1]} : vector<8x32xbf16> to vector<8x8xbf16>
    %cst_10 = arith.constant dense<0.000000e+00> : vector<8x16xf32>
    %9 = tpu.matmul %8, %1, %cst_10 {dimension_numbers = #tpu.dot_dimension_numbers<[1], [0], [0], [1], [0, 0, 1, 1], [], []>} : vector<8x8xbf16>, vector<8x16xbf16>, vector<8x16xf32> -> vector<8x16xf32>
    %c0_i32 = arith.constant 0 : i32
    %10 = vector.broadcast %c0_i32 : i32 to vector<8x16xi32>
    %11 = arith.cmpi eq, %3, %10 : vector<8x16xi32>
    %cst_11 = arith.constant 0.000000e+00 : f32
    %12 = vector.broadcast %cst_11 : f32 to vector<8x16xf32>
    %13 = arith.select %11, %9, %12 : vector<8x16xi1>, vector<8x16xf32>
    %cst_12 = arith.constant 1.000000e+00 : f32
    %14 = vector.broadcast %cst_12 : f32 to vector<8x16xf32>
    %15 = vector.extract_strided_slice %7 {offsets = [0, 8], sizes = [8, 8], strides = [1, 1]} : vector<8x32xbf16> to vector<8x8xbf16>
    %cst_13 = arith.constant dense<0.000000e+00> : vector<8x16xf32>
    %16 = tpu.matmul %15, %1, %cst_13 {dimension_numbers = #tpu.dot_dimension_numbers<[1], [0], [0], [1], [0, 0, 1, 1], [], []>} : vector<8x8xbf16>, vector<8x16xbf16>, vector<8x16xf32> -> vector<8x16xf32>
    %c1_i32 = arith.constant 1 : i32
    %17 = vector.broadcast %c1_i32 : i32 to vector<8x16xi32>
    %18 = arith.cmpi eq, %3, %17 : vector<8x16xi32>
    %cst_14 = arith.constant 0.000000e+00 : f32
    %19 = vector.broadcast %cst_14 : f32 to vector<8x16xf32>
    %20 = arith.select %18, %16, %19 : vector<8x16xi1>, vector<8x16xf32>
    %21 = arith.maximumf %9, %16 : vector<8x16xf32>
    %22 = arith.subf %9, %21 : vector<8x16xf32>
    %23 = math.exp %22 : vector<8x16xf32>
    %24 = arith.mulf %14, %23 : vector<8x16xf32>
    %25 = arith.subf %16, %21 : vector<8x16xf32>
    %26 = math.exp %25 : vector<8x16xf32>
    %27 = arith.addf %24, %26 : vector<8x16xf32>
    %28 = arith.addf %13, %20 : vector<8x16xf32>
    %29 = vector.extract_strided_slice %7 {offsets = [0, 16], sizes = [8, 8], strides = [1, 1]} : vector<8x32xbf16> to vector<8x8xbf16>
    %cst_15 = arith.constant dense<0.000000e+00> : vector<8x16xf32>
    %30 = tpu.matmul %29, %1, %cst_15 {dimension_numbers = #tpu.dot_dimension_numbers<[1], [0], [0], [1], [0, 0, 1, 1], [], []>} : vector<8x8xbf16>, vector<8x16xbf16>, vector<8x16xf32> -> vector<8x16xf32>
    %c2_i32 = arith.constant 2 : i32
    %31 = vector.broadcast %c2_i32 : i32 to vector<8x16xi32>
    %32 = arith.cmpi eq, %3, %31 : vector<8x16xi32>
    %cst_16 = arith.constant 0.000000e+00 : f32
    %33 = vector.broadcast %cst_16 : f32 to vector<8x16xf32>
    %34 = arith.select %32, %30, %33 : vector<8x16xi1>, vector<8x16xf32>
    %35 = arith.maximumf %21, %30 : vector<8x16xf32>
    %36 = arith.subf %21, %35 : vector<8x16xf32>
    %37 = math.exp %36 : vector<8x16xf32>
    %38 = arith.mulf %27, %37 : vector<8x16xf32>
    %39 = arith.subf %30, %35 : vector<8x16xf32>
    %40 = math.exp %39 : vector<8x16xf32>
    %41 = arith.addf %38, %40 : vector<8x16xf32>
    %42 = arith.addf %28, %34 : vector<8x16xf32>
    %43 = vector.extract_strided_slice %7 {offsets = [0, 24], sizes = [8, 8], strides = [1, 1]} : vector<8x32xbf16> to vector<8x8xbf16>
    %cst_17 = arith.constant dense<0.000000e+00> : vector<8x16xf32>
    %44 = tpu.matmul %43, %1, %cst_17 {dimension_numbers = #tpu.dot_dimension_numbers<[1], [0], [0], [1], [0, 0, 1, 1], [], []>} : vector<8x8xbf16>, vector<8x16xbf16>, vector<8x16xf32> -> vector<8x16xf32>
    %c3_i32 = arith.constant 3 : i32
    %45 = vector.broadcast %c3_i32 : i32 to vector<8x16xi32>
    %46 = arith.cmpi eq, %3, %45 : vector<8x16xi32>
    %cst_18 = arith.constant 0.000000e+00 : f32
    %47 = vector.broadcast %cst_18 : f32 to vector<8x16xf32>
    %48 = arith.select %46, %44, %47 : vector<8x16xi1>, vector<8x16xf32>
    %49 = arith.maximumf %35, %44 : vector<8x16xf32>
    %50 = arith.subf %35, %49 : vector<8x16xf32>
    %51 = math.exp %50 : vector<8x16xf32>
    %52 = arith.mulf %41, %51 : vector<8x16xf32>
    %53 = arith.subf %44, %49 : vector<8x16xf32>
    %54 = math.exp %53 : vector<8x16xf32>
    %55 = arith.addf %52, %54 : vector<8x16xf32>
    %56 = arith.addf %42, %48 : vector<8x16xf32>
    %c255_i32 = arith.constant 255 : i32
    %57 = vector.broadcast %c255_i32 : i32 to vector<8x16xi32>
    %58 = arith.cmpi ne, %3, %57 : vector<8x16xi32>
    %59 = math.log %55 : vector<8x16xf32>
    %60 = arith.addf %49, %59 : vector<8x16xf32>
    %61 = arith.subf %60, %56 : vector<8x16xf32>
    %cst_19 = arith.constant 0.000000e+00 : f32
    %62 = vector.broadcast %cst_19 : f32 to vector<8x16xf32>
    %63 = arith.select %58, %61, %62 : vector<8x16xi1>, vector<8x16xf32>
    %64 = vector.shape_cast %63 : vector<8x16xf32> to vector<1x8x16xf32>
    %cst_20 = arith.constant dense<0.000000e+00> : vector<1xf32>
    %65 = vector.multi_reduction <add>, %64, %cst_20 [1, 2] : vector<1x8x16xf32> to vector<1xf32>
    %66 = vector.shape_cast %65 : vector<1xf32> to vector<1x1x1xf32>
    %67 = vector.extract %66[0, 0, 0] : f32 from vector<1x1x1xf32>
    %68 = vector.broadcast %67 : f32 to vector<1x1x1xf32>
    %c0_21 = arith.constant 0 : index
    %c0_22 = arith.constant 0 : index
    %c0_23 = arith.constant 0 : index
    %69 = vector.load %arg7[%c0_21, %c0_22, %c0_23] : memref<1x1x1xf32, #tpu.memory_space<vmem>>, vector<1x1x1xf32>
    tpu.vector_store %arg7[%c0_21, %c0_22, %c0_23], %68 {strides = array<i32>} : memref<1x1x1xf32, #tpu.memory_space<vmem>>, vector<1x1x1xf32>,
    return
  }
  func.func @transform_0(%arg0: i32, %arg1: i32, %arg2: i32) -> (i32, i32, i32, i32) {
    %c0_i32 = arith.constant 0 : i32
    %c0_i32_0 = arith.constant 0 : i32
    %c0_i32_1 = arith.constant 0 : i32
    return %arg0, %arg1, %c0_i32, %c0_i32_0 : i32, i32, i32, i32
  }
  func.func @transform_1(%arg0: i32, %arg1: i32, %arg2: i32) -> (i32, i32) {
    %c0_i32 = arith.constant 0 : i32
    %c0_i32_0 = arith.constant 0 : i32
    return %arg2, %c0_i32 : i32, i32
  }
  func.func @transform_2(%arg0: i32, %arg1: i32, %arg2: i32) -> (i32, i32) {
    %c0_i32 = arith.constant 0 : i32
    %c0_i32_0 = arith.constant 0 : i32
    %c0_i32_1 = arith.constant 0 : i32
    return %c0_i32, %c0_i32_0 : i32, i32
  }
  func.func @transform_3(%arg0: i32, %arg1: i32, %arg2: i32) -> (i32, i32, i32) {
    %c0_i32 = arith.constant 0 : i32
    %c0_i32_0 = arith.constant 0 : i32
    return %arg1, %arg2, %c0_i32 : i32, i32, i32
  }
  func.func @transform_4(%arg0: i32, %arg1: i32, %arg2: i32) -> (i32, i32, i32) {
    %c2_i32 = arith.constant 2 : i32
    %0 = arith.muli %arg0, %c2_i32 : i32
    %1 = arith.addi %0, %arg1 : i32
    %c2_i32_0 = arith.constant 2 : i32
    %2 = arith.muli %1, %c2_i32_0 : i32
    %3 = arith.addi %2, %arg2 : i32
    %c0_i32 = arith.constant 0 : i32
    %c0_i32_1 = arith.constant 0 : i32
    %c0_i32_2 = arith.constant 0 : i32
    return %3, %c0_i32, %c0_i32_1 : i32, i32, i32
  }
}

</mosaic_0001>

<bundles_post_ra>
// kernel: tpu_custom_call.1
= control target key start
LH: loop header
LB: loop body
LE: loop exit
PB: predicated region body
PF: predicated region fallthrough
CT: control target
= control target key end

     0   :  { %s1196_s0 = inlined_call_operand.hbm [shape: bf16[2,2,8,32], index: 0, kind: input, shape index: {}]   ;;  %s1197_s1 = inlined_call_operand.vmem [shape: bf16[16,8], index: 1, kind: input, shape index: {}]   ;;  %s1198_s2 = inlined_call_operand.vmem [shape: bf16[8,16], index: 2, kind: input, shape index: {}]   ;;  %s1199_s3 = inlined_call_operand.hbm [shape: s32[2,16,16], index: 3, kind: input, shape index: {}]   ;;  %s1200_s4 = inlined_call_operand.vmem [shape: f32[8,1,1], index: 4, kind: output, shape index: {}]  }
   0x1   :  { %1205 = sst [smem:[#allocation14_spill]] %s1196_s0 }
   0x2   :  { %1206 = sst [smem:[#allocation15_spill]] %s1197_s1 }
   0x3   :  { %1207 = sst [smem:[#allocation16_spill]] %s1198_s2 }
   0x4   :  { %1208 = sst [smem:[#allocation17_spill]] %s1200_s4 }
   0x5   :  { %9 = vsyncpa [#allocation3], 0 }
   0x6   :  { %11 = vsyncpa [#allocation3 + $0x1], 0 }
   0x7   :  { %12 = vsyncpa [#allocation5], 0 }
   0x8   :  { %14 = vsyncpa [#allocation5 + $0x1], 0  ;;  %s965_s15 = smov 0   ;;  %s967_s16 = smov 0  }
   0x9   :  { %s969_s17 = smov 0   ;;  %s971_s18 = smov 0  }
   0xa   :  { %s973_s19 = smov 0   ;;  %s975_s20 = smov 0  }
   0xb   :  { %s977_s21 = smov 0   ;;  %s979_s22 = smov 0  }
   0xc   :  { %s981_s23 = smov 0   ;;  %s983_s24 = smov 0  }
   0xd   :  { %s985_s25 = smov 0   ;;  %s987_s26 = smov 0  }
   0xe   :  { %s989_s27 = smov 0  }
   0xf LB: > { %1209 = sst [smem:[#allocation8_spill]] %s911_s21  ;;  %s603_s28 = sadd.s32 4294967295, %s935_s27   ;;  %s935_s27 = sphi %s989_s27, %s20_s27   ;;  %s931_s26 = sphi %s987_s26, %s1241_s26   ;;  %s927_s25 = sphi %s985_s25, %s1231_s25   ;;  %s923_s24 = sphi %s983_s24, %s1240_s24   ;;  %s919_s23 = sphi %s981_s23, %s1239_s23   ;;  %s915_s22 = sphi %s979_s22, %s1229_s22   ;;  %s911_s21 = sphi %s977_s21, %s1238_s21   ;;  %s907_s20 = sphi %s975_s20, %s1237_s20   ;;  %s903_s19 = sphi %s973_s19, %s1236_s19   ;;  %s899_s18 = sphi %s971_s18, %s1235_s18   ;;  %s895_s17 = sphi %s969_s17, %s1234_s17   ;;  %s891_s16 = sphi %s967_s16, %s1233_s16   ;;  %s887_s15 = sphi %s965_s15, %s1232_s15  }
  0x10   : > { %1210 = sst [smem:[#allocation9_spill]] %s915_s22  ;;  %s39_s29 = sadd.s32 1, %s931_s26 }
  0x11   : > { %1211 = sst [smem:[#allocation10_spill]] %s919_s23  ;;  %p55_p0 = scmp.ne.s32.totalorder %s907_s20, %s903_s19 }
  0x12   : > { %1212 = sst [smem:[#allocation11_spill]] %s927_s25  ;;  %p56_p1 = scmp.eq.s32.totalorder %s935_s27, 0 }
  0x13   : > { %p61_p2 = scmp.ne.s32.totalorder %s903_s19, %s899_s18  ;;  %p1035_p3 = scmp.eq.s32.totalorder %s603_s28, 0 }
  0x14   : > { %p57_p4 = por %p56_p1, %p55_p0  ;;  %p643_p5 = scmp.lt.s32.totalorder %s935_s27, 8 }
  0x15   : > { %p1044_p6 = por %p1035_p3, %p61_p2  ;;  %s197_s7 = sand.u32 1, %s907_s20  }
  0x16   : > { %s611_s8 = sshll.u32 %s197_s7, 2  ;;  %s612_s9 = sshll.u32 %s931_s26, 1 }
  0x17   : > { %s205_s10 = sadd.s32 %s927_s25, %s612_s9  ;;  %s201_s11 = scalar_lea.vmem [#allocation2], %s611_s8 }
  0x18   : > { %s211_s12 = sshll.u32 %s201_s11, 4  ;;  %s613_s13 = sshll.u32 %s205_s10, 2  ;;  %s212_s12 = int_to_ptr.vmem [resolvable:$true] %s211_s12 }
  0x19   : > { %s1215_s0 = sld [smem:[#allocation14_spill]]  ;;  %p637_p7 = pnand %p643_p5, %p57_p4 }
  0x1a   : > { %p617_p8 = scmp.ge.s32.totalorder %s935_s27, 1  ;;  %s198_s8 = scalar_lea.sflag [#allocation3], %s197_s7 }
  0x1b   : > { %p244_p9 = scmp.lt.s32.totalorder %s935_s27, 9  ;;  %s32_s10 = sadd.s32 1, %s923_s24 }
  0x1c   : > { %s35_s11 = sadd.s32 1, %s927_s25  ;;  %p33_p11 = scmp.ge.s32.totalorder %s32_s10, 2 }
  0x1d   : > { %p1058_p10 = pnand %p617_p8, %p244_p9  ;;  %p130_p12 = scmp.ne.s32.totalorder %s895_s17, %s891_s16 }
  0x1e   : > { %p136_p13 = scmp.ne.s32.totalorder %s891_s16, %s887_s15  ;;  %s1243_s10 = smov (%p33_p11, %s32_s10), 0 }
  0x1f   : > { %s207_s28 = scalar_lea.hbm %s1215_s0, %s613_s13  ;;  %s123_s13 = sadd.s32 1, %s895_s17 }
  0x20   : > { %s209_s30 = sshll.u32 %s207_s28, 4  ;;  %1217 = sst [smem:[#allocation12_spill]] %s1243_s10  ;;  %s210_s30 = int_to_ptr.hbm [resolvable:$true] %s209_s30 }
  0x21   : > { %639 = dma.hbm_to_vmem [thread:$0]  (!%p637_p7), %s210_s30, 64, %s212_s12, %s198_s8  }
  0x22   : > { %s1245_s11 = smov (!%p33_p11, %s35_s11), %s927_s25  ;;  %s119_s30 = ssub.s32 %s923_s24, %s1243_s10 }
  0x23   : > { %p1076_p0 = por %p130_p12, %p56_p1  ;;  %p37_p2 = scmp.ge.s32.totalorder %s1245_s11, 2 }
  0x24   : > { %p1082_p4 = por %p136_p13, %p1035_p3  ;;  %s225_s15 = sand.u32 1, %s895_s17  }
  0x25   : > { %s615_s14 = sshll.u32 %s927_s25, 1  ;;  %s1247_s11 = smov (%p37_p2, %s1245_s11), 0 }
  0x26   : > { %1220 = sst [smem:[#allocation13_spill]] %s1247_s11  ;;  %s1249_s29 = smov (!%p37_p2, %s39_s29), %s931_s26 }
  0x27   : > { %s44_s18 = ssub.s32 %s927_s25, %s1247_s11  ;;  %p41_p1 = scmp.ge.s32.totalorder %s1249_s29, 2 }
  0x28   : > { %s120_s28 = sor.u32 %s119_s30, %s44_s18  ;;  %s614_s5 = sshll.u32 %s225_s15, 3 }
  0x29   : > { %p121_p7 = scmp.eq.s32.totalorder %s120_s28, 0  ;;  %s1251_s29 = smov (%p41_p1, %s1249_s29), 0 }
  0x2a   : > { %s43_s0 = ssub.s32 %s931_s26, %s1251_s29  ;;  %s233_s4 = sadd.s32 %s923_s24, %s615_s14 }
  0x2b   : > { %s1098_s8 = scalar_select %p121_p7, %s895_s17, %s123_s13  }
  0x2c   : > { %s45_s10 = sor.u32 %s44_s18, %s43_s0  ;;  %s616_s22 = sshll.u32 %s233_s4, 3 }
  0x2d   : > { %p46_p3 = scmp.eq.s32.totalorder %s45_s10, 0  ;;  %s235_s11 = scalar_lea.hbm %s1199_s3, %s616_s22 }
  0x2e   : > { %s229_s25 = scalar_lea.vmem [#allocation4], %s614_s5  ;;  %s1221_s28 = sadd.s32 1, %s907_s20 }
  0x2f   : > { %s239_s30 = sshll.u32 %s229_s25, 4  ;;  %s237_s21 = sshll.u32 %s235_s11, 4  ;;  %s240_s30 = int_to_ptr.vmem [resolvable:$true] %s239_s30  ;;  %s238_s21 = int_to_ptr.hbm [resolvable:$true] %s237_s21 }
  0x30   : > { %s1109_s1 = scalar_select %p46_p3, %s907_s20, %s1221_s28  }
  0x31   : > { %p640_p8 = pnand %p643_p5, %p1076_p0  ;;  %s226_s13 = scalar_lea.sflag [#allocation5], %s225_s15 }
  0x32   : > { %248 = sbr.rel (%p1058_p10) target bundleno = 676 (0x2a4), region = 36  ;;  %s250_s0 = sand.u32 (!%p1058_p10), 1, %s903_s19  }
  0x33   : > { %642 = dma.hbm_to_vmem [thread:$0]  (!%p640_p8), %s238_s21, 128, %s240_s30, %s226_s13  }
  0x34   : > { %s618_s2 = sshll.u32 (!%p1058_p10), %s250_s0, 2  ;;  %s251_s4 = scalar_lea.sflag (!%p1058_p10), [#allocation3], %s250_s0 }
  0x35   : > { %s254_s22 = scalar_lea.vmem (!%p1058_p10), [#allocation2], %s618_s2 }
  0x37   : > { %878 = dma.done.wait (%p1044_p6), %s251_s4, 64  }
  0x38   : > { %880 = vsyncadd (%p1044_p6), %s251_s4, 4294967232  ;;  %s260_s23 = sand.u32 1, %s891_s16  }
  0x39   : > { %s1123_s25 = sshll.u32 %s260_s23, 3  ;;  %s261_s21 = scalar_lea.sflag [#allocation5], %s260_s23 }
  0x3a   : > { %s264_s9 = scalar_lea.vmem [#allocation4], %s1123_s25 }
  0x3b   : > { %882 = dma.done.wait (%p1082_p4), %s261_s21, 128  }
  0x3c   : > { %884 = vsyncadd (%p1082_p4), %s261_s21, 4294967168  ;;  %s1222_s10 = sld [smem:[#allocation8_spill]]  ;;  %vm325_vm0 = vcmask 1043456   ;;  %v320_v1 = vld [vmem:[%s254_s22] sm:$0xf]  ;;  %vm321_vm1 = vcmask 64512  }
  0x3d   : > { %s1223_s14 = sld [smem:[#allocation15_spill]]  ;;  %v327_v2 = vsel %vm325_vm0, %v320_v1, 0  ;;  %s937_s12 = smov 104   ;;  %v319_v44 = vld [vmem:[%s264_s9] sm:$0xff]  ;;  %vm462_vm7 = vcmask 130048   ;;  %vm474_vm8 = vcmask 0  }
  0x3e   : > { %s1224_s28 = sld [smem:[#allocation16_spill]]  ;;  %336 = vmatpush.bf16.msra.mxu0 %v327_v2  ;;  %s938_s13 = smov 120   ;;  %vm385_vm2 = vcmp.eq.s32.totalorder %v319_v44, 1  ;;  %vm362_vm3 = vcmp.eq.s32.totalorder %v319_v44, 0  ;;  %vm414_vm4 = vcmp.eq.s32.totalorder %v319_v44, 2  ;;  %vm444_vm5 = vcmp.eq.s32.totalorder %v319_v44, 3 }
  0x3f   : > { %s939_s0 = smov 112   ;;  %s1225_s2 = sld [smem:[#allocation10_spill]]  ;;  %vm456_vm6 = vcmp.ne.s32.totalorder %v319_v44, 255 }
  0x40   : > { %s1226_s4 = sld [smem:[#allocation9_spill]] }
  0x42   : > { %p301_p5 = scmp.lt.s32.totalorder %s1222_s10, 1 }
  0x44   : > { %s302_s11 = scalar_select %p301_p5, %s1222_s10, 1  ;;  %v318_v0 = vld [vmem:[%s1224_s28] sm:$0xf] }
  0x45   : > { %v347_v3 = vsel %vm325_vm0, %v318_v0, 0  ;;  %s621_s22 = sshll.u32 %s1225_s2, 1 }
  0x46   : > { %s620_s7 = sshll.u32 %s302_s11, 2  ;;  %356 = vmatpush.bf16.msra.mxu1 %v347_v3  ;;  %379 = vmatpush.bf16.msra.mxu2 %v347_v3  ;;  %s306_s23 = sadd.s32 %s1226_s4, %s621_s22 }
  0x47   : > { %s304_s18 = scalar_lea.vmem %s1223_s14, %s620_s7  ;;  %438 = vmatpush.bf16.msrb.mxu0 %v347_v3  ;;  %408 = vmatpush.bf16.msra.mxu3 %v347_v3  ;;  %s622_s25 = sshll.u32 %s306_s23, 1 }
  0x48   : > { %v317_v4 = vld [vmem:[%s304_s18] sm:$0xf]  ;;  %s308_s21 = sadd.s32 %s1222_s10, %s622_s25  ;;  %s1227_s7 = sld [smem:[#allocation17_spill]] }
  0x49   : > { %623 = vmatmul.msk.bf16.vlgmr.msra.gmra.mxu0 %vm321_vm1, %v317_v4  ;;  %p309_p6 = scmp.lt.s32.totalorder %s308_s21, 7 }
  0x4b   : > { %s1253_s21 = smov (!%p309_p6, %s308_s21), 7 }
  0x4e   : > { %s311_s6 = scalar_lea.vmem %s1227_s7, %s1253_s21 }
  0xc6   : > { %v338_v5 = vpop.f32.mrf.mxu0 }
  0xc7   : > { %v342_v6 = vpack.c.bf16 %v338_v5, %v338_v5 }
  0xc9   : > { %v365_v7 = vunpack.c.l.b16 %v342_v6  ;;  %624 = vmatmul.msk.bf16.vlgmr.msra.gmra.mxu1 %vm321_vm1, %v342_v6 }
  0xcb   : > { %v366_v8 = vpack.c.b16 %v365_v7, %v365_v7 }
  0xcd   : > { %426 = vrot.lane.b32.xlu1 %v366_v8, %s937_s12  ;;  %367 = vrot.lane.b32.xlu0 %v366_v8, %s938_s13 }
  0xce   : > { %v340_v9 = vpop.f32.mrf.mxu0 }
  0xd5   : > { %396 = vrot.lane.b32.xlu0 %v366_v8, %s939_s0 }
 0x13f   : > { %v427_v10 = vpop.permute.xlu1 %426  ;;  %v368_v11 = vpop.permute.xlu0 %367 }
 0x140   : > { %625 = vmatmul.msk.bf16.vlgmr.msra.gmra.mxu2 %vm321_vm1, %v368_v11  ;;  %627 = vmatmul.msk.bf16.vlgmr.msrb.gmra.mxu0 %vm321_vm1, %v427_v10 }
 0x146   : > { %v358_v12 = vpop.f32.mrf.mxu1 }
 0x147   : > { %v397_v13 = vpop.permute.xlu0 %396  ;;  %v363_v49 = vsel %vm362_vm3, %v358_v12, 0.0 }
 0x148   : > { %626 = vmatmul.msk.bf16.vlgmr.msra.gmra.mxu3 %vm321_vm1, %v397_v13 }
 0x14e   : > { %v360_v14 = vpop.f32.mrf.mxu1 }
 0x1bd   : > { %v440_v15 = vpop.f32.mrf.mxu0 }
 0x1be   : > { %v445_v55 = vsel %vm444_vm5, %v440_v15, 0.0 }
 0x1c3   : > { %v381_v16 = vpop.f32.mrf.mxu2 }
 0x1c4   : > { %v387_v17 = vmax.f32 %v358_v12, %v381_v16  ;;  %v386_v48 = vsel %vm385_vm2, %v381_v16, 0.0 }
 0x1c5   : > { %v442_v18 = vpop.f32.mrf.mxu0  ;;  %v395_v51 = vadd.f32 %v386_v48, %v363_v49 }
 0x1c6   : > { %v388_v19 = vsub.f32 %v358_v12, %v387_v17  ;;  %v391_v20 = vsub.f32 %v381_v16, %v387_v17 }
 0x1c8   : > { %v389_v21 = vmul.f32 1.442695, %v388_v19  ;;  %v392_v22 = vmul.f32 1.442695, %v391_v20 }
 0x1ca   : > { %751 = vpow2.f32 %v389_v21 }
 0x1cb   : > { %v383_v23 = vpop.f32.mrf.mxu2  ;;  %v410_v24 = vpop.f32.mrf.mxu3  ;;  %753 = vpow2.f32 %v392_v22 }
 0x1cc   : > { %v416_v25 = vmax.f32 %v387_v17, %v410_v24  ;;  %v415_v50 = vsel %vm414_vm4, %v410_v24, 0.0 }
 0x1cd   : > { %v425_v52 = vadd.f32 %v415_v50, %v395_v51 }
 0x1ce   : > { %v417_v26 = vsub.f32 %v387_v17, %v416_v25  ;;  %v421_v27 = vsub.f32 %v410_v24, %v416_v25  ;;  %v446_v28 = vmax.f32 %v416_v25, %v440_v15 }
 0x1cf   : > { %v455_v56 = vadd.f32 %v445_v55, %v425_v52 }
 0x1d0   : > { %v418_v29 = vmul.f32 1.442695, %v417_v26  ;;  %v422_v30 = vmul.f32 1.442695, %v421_v27  ;;  %v447_v31 = vsub.f32 %v416_v25, %v446_v28  ;;  %v451_v32 = vsub.f32 %v440_v15, %v446_v28  ;;  %v752_v34 = vpop.eup %751 }
 0x1d1   : > { %v754_v36 = vpop.eup %753 }
 0x1d2   : > { %755 = vpow2.f32 %v418_v29  ;;  %v448_v33 = vmul.f32 1.442695, %v447_v31  ;;  %v452_v37 = vmul.f32 1.442695, %v451_v32  ;;  %v394_v38 = vadd.f32 %v754_v36, %v752_v34 }
 0x1d3   : > { %v412_v35 = vpop.f32.mrf.mxu3  ;;  %757 = vpow2.f32 %v422_v30 }
 0x1d4   : > { %759 = vpow2.f32 %v448_v33 }
 0x1d5   : > { %761 = vpow2.f32 %v452_v37 }
 0x1d8   : > { %v756_v39 = vpop.eup %755 }
 0x1d9   : > { %v420_v40 = vmul.f32 %v756_v39, %v394_v38  ;;  %v758_v41 = vpop.eup %757 }
 0x1da   : > { %v760_v43 = vpop.eup %759 }
 0x1db   : > { %v424_v42 = vadd.f32 %v758_v41, %v420_v40  ;;  %v762_v46 = vpop.eup %761 }
 0x1dd   : > { %v450_v45 = vmul.f32 %v760_v43, %v424_v42 }
 0x1df   : > { %v454_v47 = vadd.f32 %v762_v46, %v450_v45 }
 0x1e1   : > { %763 = vlog2.f32 %v454_v47 }
 0x1e7   : > { %v764_v53 = vpop.eup %763 }
 0x1e8   : > { %v458_v54 = vmul.f32 0.6931472, %v764_v53 }
 0x1ea   : > { %v459_v57 = vadd.f32 %v458_v54, %v446_v28 }
 0x1ec   : > { %v460_v58 = vsub.f32 %v459_v57, %v455_v56 }
 0x1ee   : > { %v461_v59 = vsel %vm456_vm6, %v460_v58, 0.0 }
 0x1ef   : > { %v463_v60 = vsel %vm462_vm7, %v461_v59, 0.0 }
 0x1f0   : > { %464 = vadd.xlane.f32.xlu1 %v463_v60 }
 0x263   : > { %v465_v61 = vpop.xlane.xlu1 %464 }
 0x264   : > { %v466_v62 = vrot.slane %v465_v61, 4 }
 0x266   : > { %v467_v63 = vadd.f32 %v466_v62, %v465_v61 }
 0x268   : > { %v468_v0 = vrot.slane %v467_v63, 2 }
 0x26a   : > { %v469_v1 = vadd.f32 %v468_v0, %v467_v63 }
 0x26c   : > { %v470_v2 = vrot.slane %v469_v1, 1 }
 0x26e   : > { %v471_v3 = vadd.f32 %v470_v2, %v469_v1 }
 0x270   : > { %630 = vpush %v471_v3 }
 0x2a1   : > { %s631_s15 = spop %630 }
 0x2a2   : > { %v473_v4 = vstv %s631_s15 }
 0x2a3   : > { %475 = vst.msk [vmem:[%s311_s6] sm:$0x1] %vm474_vm8, %v473_v4 }
 0x2a4 PF: > { %s20_s27 = sadd.s32 1, %s935_s27   ;;  %s1229_s22 = sld [smem:[#allocation11_spill]] }
 0x2a5   : > { %p1152_p9 = scmp.ge.s32.totalorder %s20_s27, 10   ;;  %s1230_s10 = sld [smem:[#allocation12_spill]] }
 0x2a6   : > { %s1231_s25 = sld [smem:[#allocation13_spill]]  ;;  %s1232_s15 = smov %s891_s16 }
 0x2a7   : > { %s1233_s16 = smov %s895_s17  ;;  %s1234_s17 = smov %s1098_s8 }
 0x2a8   : > { %s1235_s18 = smov %s903_s19  ;;  %s1236_s19 = smov %s907_s20 }
 0x2a9   : > { %s1237_s20 = smov %s1109_s1  ;;  %s1238_s21 = smov %s923_s24 }
 0x2aa   : > { %s1239_s23 = smov %s931_s26  ;;  %s1241_s26 = smov %s1251_s29 }
 0x2ab   : > { %s1240_s24 = smov %s1230_s10  ;;  %19 = sbr.rel (!%p1152_p9) target bundleno = 15 (0xf), region = 92 }
 0x2b0   :  { %505 = vsyncpa [#allocation3], 1 }
 0x2b1   :  { %507 = vsyncpa [#allocation3 + $0x1], 1 }
 0x2b2   :  { %508 = vsyncpa [#allocation5], 1 }
 0x2b3   :  { %510 = vsyncpa [#allocation5 + $0x1], 1 }

</bundles_post_ra>
